<compile_context>
chip_gen: v7x
topology: tpu7x:2x2x1
jax: 0.10.0
libtpu: 0.0.40
codegen_flags: <defaults>
</compile_context>

<pallas_src>
import math
import functools

import jax
import jax.numpy as jnp
from jax.experimental import pallas as pl
from jax.experimental.pallas import tpu as pltpu


def attention_kernel(*refs, scaling, use_mask):
    if use_mask:
        mask_ref, xq_ref, xk_ref, xv_ref, wq_ref, wk_ref, wv_ref, o_ref = refs
    else:
        xq_ref, xk_ref, xv_ref, wq_ref, wk_ref, wv_ref, o_ref = refs
        mask_ref = None

    f32 = jnp.float32
    B, N, _ = xq_ref.shape

    # --- projections: q = X_q @ W_Q, k = X_k @ W_K, v = X_v @ W_V (no bias) ---
    # Weights are tiny (E x D); replicate across the batch dim in-kernel (one cheap
    # broadcast, trailing dims preserved) and use the proven batched-matmul form.
    wq = jnp.broadcast_to(wq_ref[...], (B,) + tuple(wq_ref.shape))
    wk = jnp.broadcast_to(wk_ref[...], (B,) + tuple(wk_ref.shape))
    wv = jnp.broadcast_to(wv_ref[...], (B,) + tuple(wv_ref.shape))
    q = jnp.einsum('bnf,bfd->bnd', xq_ref[...], wq, preferred_element_type=f32)
    k = jnp.einsum('bnf,bfd->bnd', xk_ref[...], wk, preferred_element_type=f32)
    v = jnp.einsum('bnf,bfd->bnd', xv_ref[...], wv, preferred_element_type=f32)

    # --- scaled dot-product scores: dots[b, i, j] = q[b, i] . k[b, j] ---
    dots = jnp.einsum('bid,bjd->bij', q, k, preferred_element_type=f32) * scaling

    if use_mask:
        # pairwise mask built in-kernel: keep[b,i,j] = mask[b,i] & mask[b,j] & (i!=j)
        m = mask_ref[...]                                       # (B, N) of 0/1
        keep = (m[:, :, None] > 0.5) & (m[:, None, :] > 0.5)    # (B, N, N)
        row = jax.lax.broadcasted_iota(jnp.int32, (B, N, N), 1)
        col = jax.lax.broadcasted_iota(jnp.int32, (B, N, N), 2)
        keep = keep & (row != col)                              # zero the diagonal
        dots = jnp.where(keep, dots, -jnp.finfo(f32).max)

    # --- numerically-stable softmax over the last axis (exact division) ---
    dots = dots - jnp.max(dots, axis=-1, keepdims=True)
    p = jnp.exp(dots)
    attn = p / jnp.sum(p, axis=-1, keepdims=True)

    # --- weighted sum of values ---
    o_ref[...] = jnp.einsum('bij,bjd->bid', attn, v, preferred_element_type=f32)


def attention(Q_vec, K_vec, V_vec, mask, wq, wk, wv, *, d_attention):
    """Pallas port of Attention.forward.

    Q_vec: (B, N, E); K_vec/V_vec: (B, N, E2); mask: (B, N) of 0/1 (or None).
    wq: (E, D), wk/wv: (E2, D) stored as (in, out)  (== torch Linear weight.T).
    Returns (B, N, D) float32.
    """
    f32 = jnp.float32
    B, N, E = Q_vec.shape
    E2 = K_vec.shape[-1]
    D = d_attention
    use_mask = mask is not None
    scaling = 1.0 / math.sqrt(D)

    kernel = functools.partial(attention_kernel, scaling=scaling, use_mask=use_mask)

    inputs = [Q_vec.astype(f32), K_vec.astype(f32), V_vec.astype(f32),
              wq.astype(f32), wk.astype(f32), wv.astype(f32)]
    if use_mask:
        inputs.insert(0, mask.astype(f32))

    vmem = pl.BlockSpec(memory_space=pltpu.MemorySpace.VMEM)

    # advisory cost estimate so XLA schedules this as the tiny op it is
    flops = 2 * B * N * D * (E + 2 * E2) + 4 * B * N * N * D
    bytes_accessed = 4 * (sum(int(x.size) for x in inputs) + B * N * D)
    cost = pl.CostEstimate(flops=flops, transcendentals=B * N * N,
                           bytes_accessed=bytes_accessed)

    # Grid-less call: whole problem (a few KB) resident in VMEM, one invocation.
    return pl.pallas_call(
        kernel,
        out_shape=jax.ShapeDtypeStruct((B, N, D), f32),
        in_specs=[vmem] * len(inputs),
        out_specs=vmem,
        cost_estimate=cost,
    )(*inputs)


# ---------------- pure-JAX reference (mirrors the PyTorch forward) ----------------
def reference(Q_vec, K_vec, V_vec, mask, wq, wk, wv, d_attention):
    B, N, _ = Q_vec.shape
    q = Q_vec @ wq
    k = K_vec @ wk
    v = V_vec @ wv
    dots = jnp.einsum('bid,bjd->bij', q, k) * (1.0 / math.sqrt(d_attention))
    if mask is not None:
        pm = mask[:, None, :] * mask[:, :, None]
        pm = pm * (1.0 - jnp.eye(N, dtype=jnp.float32))
        dots = jnp.where(pm > 0.5, dots, -jnp.finfo(jnp.float32).max)
    attn = jax.nn.softmax(dots, axis=-1)
    return jnp.einsum('bij,bjd->bid', attn, v)


if __name__ == "__main__":
    # Attention defaults in monstereo: embed_dim=3, d_attention=3, n_words=20
    B, N, E, E2, D = 4, 20, 3, 3, 3

    keys = jax.random.split(jax.random.PRNGKey(0), 6)
    Q_vec = jax.random.normal(keys[0], (B, N, E), jnp.float32)
    K_vec = jax.random.normal(keys[1], (B, N, E2), jnp.float32)
    V_vec = jax.random.normal(keys[2], (B, N, E2), jnp.float32)
    wq = (0.4 * jax.random.normal(keys[3], (E, D))).astype(jnp.float32)
    wk = (0.4 * jax.random.normal(keys[4], (E2, D))).astype(jnp.float32)
    wv = (0.4 * jax.random.normal(keys[5], (E2, D))).astype(jnp.float32)

    # pad last 5 tokens of batch 1 and last 8 of batch 3
    mask = jnp.ones((B, N), jnp.float32).at[1, -5:].set(0.0).at[3, -8:].set(0.0)

    # masked path
    out = attention(Q_vec, K_vec, V_vec, mask, wq, wk, wv, d_attention=D)
    out = jax.block_until_ready(out)
    ref = reference(Q_vec, K_vec, V_vec, mask, wq, wk, wv, d_attention=D)
    assert out.shape == (B, N, D)
    err = float(jnp.max(jnp.abs(out - ref)))
    assert err < 2e-3, f"max abs err (masked) = {err}"

    # unmasked path (mask=None branch of the module)
    out_nm = attention(Q_vec, K_vec, V_vec, None, wq, wk, wv, d_attention=D)
    out_nm = jax.block_until_ready(out_nm)
    ref_nm = reference(Q_vec, K_vec, V_vec, None, wq, wk, wv, d_attention=D)
    err_nm = float(jnp.max(jnp.abs(out_nm - ref_nm)))
    assert err_nm < 2e-3, f"max abs err (no mask) = {err_nm}"

    print("KERNEL_OK")
</pallas_src>

<mosaic_0001>
module attributes {stable_mosaic.version = 11 : i64} {
  func.func @attention_kernel(%arg0: memref<4x20xf32, #tpu.memory_space<vmem>>, %arg1: memref<4x20x3xf32, #tpu.memory_space<vmem>>, %arg2: memref<4x20x3xf32, #tpu.memory_space<vmem>>, %arg3: memref<4x20x3xf32, #tpu.memory_space<vmem>>, %arg4: memref<3x3xf32, #tpu.memory_space<vmem>>, %arg5: memref<3x3xf32, #tpu.memory_space<vmem>>, %arg6: memref<3x3xf32, #tpu.memory_space<vmem>>, %arg7: memref<4x20x3xf32, #tpu.memory_space<vmem>>) attributes {dimension_semantics = [], scalar_prefetch = 0 : i64, scratch_operands = 0 : i64, tpu.core_type = #tpu.core_type<tc>} {
    %c0 = arith.constant 0 : index
    %c0_0 = arith.constant 0 : index
    %0 = vector.load %arg4[%c0, %c0_0] : memref<3x3xf32, #tpu.memory_space<vmem>>, vector<3x3xf32>
    %1 = vector.shape_cast %0 : vector<3x3xf32> to vector<1x3x3xf32>
    %2 = vector.broadcast %1 : vector<1x3x3xf32> to vector<4x3x3xf32>
    %c0_1 = arith.constant 0 : index
    %c0_2 = arith.constant 0 : index
    %3 = vector.load %arg5[%c0_1, %c0_2] : memref<3x3xf32, #tpu.memory_space<vmem>>, vector<3x3xf32>
    %4 = vector.shape_cast %3 : vector<3x3xf32> to vector<1x3x3xf32>
    %5 = vector.broadcast %4 : vector<1x3x3xf32> to vector<4x3x3xf32>
    %c0_3 = arith.constant 0 : index
    %c0_4 = arith.constant 0 : index
    %6 = vector.load %arg6[%c0_3, %c0_4] : memref<3x3xf32, #tpu.memory_space<vmem>>, vector<3x3xf32>
    %7 = vector.shape_cast %6 : vector<3x3xf32> to vector<1x3x3xf32>
    %8 = vector.broadcast %7 : vector<1x3x3xf32> to vector<4x3x3xf32>
    %c0_5 = arith.constant 0 : index
    %c0_6 = arith.constant 0 : index
    %c0_7 = arith.constant 0 : index
    %9 = vector.load %arg1[%c0_5, %c0_6, %c0_7] : memref<4x20x3xf32, #tpu.memory_space<vmem>>, vector<4x20x3xf32>
    "tpu.trace_start"() <{level = 10 : i32, message = "bnf,bfd->bnd"}> : () -> ()
    %cst = arith.constant dense<0.000000e+00> : vector<4x20x3xf32>
    %10 = tpu.matmul %9, %2, %cst {dimension_numbers = #tpu.dot_dimension_numbers<[2], [1], [1], [2], [0, 0, 0, 1, 1, 2], [0], [0]>} : vector<4x20x3xf32>, vector<4x3x3xf32>, vector<4x20x3xf32> -> vector<4x20x3xf32>
    "tpu.trace_stop"() : () -> ()
    %c0_8 = arith.constant 0 : index
    %c0_9 = arith.constant 0 : index
    %c0_10 = arith.constant 0 : index
    %11 = vector.load %arg2[%c0_8, %c0_9, %c0_10] : memref<4x20x3xf32, #tpu.memory_space<vmem>>, vector<4x20x3xf32>
    "tpu.trace_start"() <{level = 10 : i32, message = "bnf,bfd->bnd"}> : () -> ()
    %cst_11 = arith.constant dense<0.000000e+00> : vector<4x20x3xf32>
    %12 = tpu.matmul %11, %5, %cst_11 {dimension_numbers = #tpu.dot_dimension_numbers<[2], [1], [1], [2], [0, 0, 0, 1, 1, 2], [0], [0]>} : vector<4x20x3xf32>, vector<4x3x3xf32>, vector<4x20x3xf32> -> vector<4x20x3xf32>
    "tpu.trace_stop"() : () -> ()
    %c0_12 = arith.constant 0 : index
    %c0_13 = arith.constant 0 : index
    %c0_14 = arith.constant 0 : index
    %13 = vector.load %arg3[%c0_12, %c0_13, %c0_14] : memref<4x20x3xf32, #tpu.memory_space<vmem>>, vector<4x20x3xf32>
    "tpu.trace_start"() <{level = 10 : i32, message = "bnf,bfd->bnd"}> : () -> ()
    %cst_15 = arith.constant dense<0.000000e+00> : vector<4x20x3xf32>
    %14 = tpu.matmul %13, %8, %cst_15 {dimension_numbers = #tpu.dot_dimension_numbers<[2], [1], [1], [2], [0, 0, 0, 1, 1, 2], [0], [0]>} : vector<4x20x3xf32>, vector<4x3x3xf32>, vector<4x20x3xf32> -> vector<4x20x3xf32>
    "tpu.trace_stop"() : () -> ()
    "tpu.trace_start"() <{level = 10 : i32, message = "bid,bjd->bij"}> : () -> ()
    %cst_16 = arith.constant dense<0.000000e+00> : vector<4x20x20xf32>
    %15 = tpu.matmul %10, %12, %cst_16 {dimension_numbers = #tpu.dot_dimension_numbers<[2], [2], [1], [1], [0, 0, 0, 1, 1, 1], [0], [0]>} : vector<4x20x3xf32>, vector<4x20x3xf32>, vector<4x20x20xf32> -> vector<4x20x20xf32>
    "tpu.trace_stop"() : () -> ()
    %cst_17 = arith.constant 0.577350259 : f32
    %16 = vector.broadcast %cst_17 : f32 to vector<4x20x20xf32>
    %17 = arith.mulf %15, %16 : vector<4x20x20xf32>
    %c0_18 = arith.constant 0 : index
    %c0_19 = arith.constant 0 : index
    %18 = vector.load %arg0[%c0_18, %c0_19] : memref<4x20xf32, #tpu.memory_space<vmem>>, vector<4x20xf32>
    %19 = vector.shape_cast %18 : vector<4x20xf32> to vector<4x20x1xf32>
    %cst_20 = arith.constant 5.000000e-01 : f32
    %20 = vector.broadcast %cst_20 : f32 to vector<4x20x1xf32>
    %21 = arith.cmpf ogt, %19, %20 : vector<4x20x1xf32>
    %22 = vector.shape_cast %18 : vector<4x20xf32> to vector<4x1x20xf32>
    %cst_21 = arith.constant 5.000000e-01 : f32
    %23 = vector.broadcast %cst_21 : f32 to vector<4x1x20xf32>
    %24 = arith.cmpf ogt, %22, %23 : vector<4x1x20xf32>
    %25 = vector.broadcast %21 : vector<4x20x1xi1> to vector<4x20x20xi1>
    %26 = vector.broadcast %24 : vector<4x1x20xi1> to vector<4x20x20xi1>
    %27 = arith.andi %25, %26 : vector<4x20x20xi1>
    %28 = tpu.iota {dimensions = array<i32: 1>} : vector<4x20x20xi32>
    %29 = tpu.iota {dimensions = array<i32: 2>} : vector<4x20x20xi32>
    %30 = arith.cmpi ne, %28, %29 : vector<4x20x20xi32>
    %31 = arith.andi %27, %30 : vector<4x20x20xi1>
    %cst_22 = arith.constant -3.40282347E+38 : f32
    %32 = vector.broadcast %cst_22 : f32 to vector<4x20x20xf32>
    %33 = arith.select %31, %17, %32 : vector<4x20x20xi1>, vector<4x20x20xf32>
    %cst_23 = arith.constant dense<0xFF800000> : vector<4x20xf32>
    %34 = vector.multi_reduction <maximumf>, %33, %cst_23 [2] : vector<4x20x20xf32> to vector<4x20xf32>
    %35 = vector.shape_cast %34 : vector<4x20xf32> to vector<4x20x1xf32>
    %36 = vector.broadcast %35 : vector<4x20x1xf32> to vector<4x20x20xf32>
    %37 = arith.subf %33, %36 : vector<4x20x20xf32>
    %38 = math.exp %37 : vector<4x20x20xf32>
    %cst_24 = arith.constant dense<0.000000e+00> : vector<4x20xf32>
    %39 = vector.multi_reduction <add>, %38, %cst_24 [2] : vector<4x20x20xf32> to vector<4x20xf32>
    %40 = vector.shape_cast %39 : vector<4x20xf32> to vector<4x20x1xf32>
    %41 = vector.broadcast %40 : vector<4x20x1xf32> to vector<4x20x20xf32>
    %42 = arith.divf %38, %41 : vector<4x20x20xf32>
    "tpu.trace_start"() <{level = 10 : i32, message = "bij,bjd->bid"}> : () -> ()
    %cst_25 = arith.constant dense<0.000000e+00> : vector<4x20x3xf32>
    %43 = tpu.matmul %42, %14, %cst_25 {dimension_numbers = #tpu.dot_dimension_numbers<[2], [1], [1], [2], [0, 0, 0, 1, 1, 2], [0], [0]>} : vector<4x20x20xf32>, vector<4x20x3xf32>, vector<4x20x3xf32> -> vector<4x20x3xf32>
    "tpu.trace_stop"() : () -> ()
    %c0_26 = arith.constant 0 : index
    %c0_27 = arith.constant 0 : index
    %c0_28 = arith.constant 0 : index
    %44 = vector.load %arg7[%c0_26, %c0_27, %c0_28] : memref<4x20x3xf32, #tpu.memory_space<vmem>>, vector<4x20x3xf32>
    tpu.vector_store %arg7[%c0_26, %c0_27, %c0_28], %43 {strides = array<i32>} : memref<4x20x3xf32, #tpu.memory_space<vmem>>, vector<4x20x3xf32>,
    return
  }
}

</mosaic_0001>

<bundles_post_ra>
// kernel: tpu_custom_call.1
= control target key start
LH: loop header
LB: loop body
LE: loop exit
PB: predicated region body
PF: predicated region fallthrough
CT: control target
= control target key end

     0   :  { %vm51_vm0 = vcmask 1042432   ;;  %v2784_v0 = vmov 0.0   ;;  %vm3594_vm1 = vcmask 23552   ;;  %vm3596_vm2 = vmmov 0   ;;  %s3586_s4 = inlined_call_operand.vmem [shape: f32[3,3], index: 4, kind: input, shape index: {}]   ;;  %s3587_s1 = inlined_call_operand.vmem [shape: f32[4,20,3], index: 1, kind: input, shape index: {}]   ;;  %s3588_s5 = inlined_call_operand.vmem [shape: f32[3,3], index: 5, kind: input, shape index: {}]   ;;  %s3589_s2 = inlined_call_operand.vmem [shape: f32[4,20,3], index: 2, kind: input, shape index: {}]   ;;  %s3590_s6 = inlined_call_operand.vmem [shape: f32[3,3], index: 6, kind: input, shape index: {}]   ;;  %s3591_s3 = inlined_call_operand.vmem [shape: f32[4,20,3], index: 3, kind: input, shape index: {}]   ;;  %s3592_s0 = inlined_call_operand.vmem [shape: f32[4,20], index: 0, kind: input, shape index: {}]   ;;  %s3593_s7 = inlined_call_operand.vmem [shape: f32[4,20,3], index: 7, kind: output, shape index: {}]  }
   0x1   :  { %2451 = vmatprep.subr.mxu0 %v2784_v0  ;;  %2462 = vmatprep.subr.mxu1 %v2784_v0  ;;  %v26_v1 = vld [vmem:[%s3586_s4] sm:$0x7]  ;;  %v32_v3 = vld [vmem:[%s3587_s1 + $0x18] sm:$0xff]  ;;  %v30_v4 = vld [vmem:[%s3587_s1 + $0x8] sm:$0xff]  ;;  %v2786_v37 = vmov 0.0|0.0   ;;  %v1549_v41 = vlaneseq  ;;  %vm3595_vm4 = vcmask 1043456  }
   0x2   :  { %v29_v2 = vld [vmem:[%s3587_s1] sm:$0xff]  ;;  %2452 = vmatpush3.msk.msra.mxu0 %vm51_vm0, %v26_v1  ;;  %2453 = vmatprep.mubr.msk.f32.mxu0 %vm3596_vm2, %v2784_v0  ;;  %v31_v6 = vld [vmem:[%s3587_s1 + $0x10] sm:$0xf]  ;;  %v34_v7 = vld [vmem:[%s3587_s1 + $0x28] sm:$0xf] }
   0x3   :  { %2463 = vmatpush3.msk.msra.mxu1 %vm51_vm0, %v26_v1  ;;  %2464 = vmatprep.mubr.msk.f32.mxu1 %vm3596_vm2, %v2784_v0  ;;  %v33_v5 = vld [vmem:[%s3587_s1 + $0x20] sm:$0xff]  ;;  %v35_v8 = vld [vmem:[%s3587_s1 + $0x30] sm:$0xff]  ;;  %v38_v9 = vld [vmem:[%s3587_s1 + $0x48] sm:$0xff]  ;;  %v3085_v42 = vshrl.u32 %v1549_v41, 7 }
   0x4   :  { %2454 = vmatmul.mubr.msk.f32.vlgmr.msra.gmra.mrb[0].mxu0 %vm3594_vm1, %v29_v2  ;;  %2465 = vmatmul.mubr.msk.f32.vlgmr.msra.gmra.mrb[0].mxu1 %vm3594_vm1, %v32_v3  ;;  %v27_v10 = vld [vmem:[%s3588_s5] sm:$0x7]  ;;  %v36_v11 = vld [vmem:[%s3587_s1 + $0x38] sm:$0xff]  ;;  %v39_v12 = vld [vmem:[%s3587_s1 + $0x50] sm:$0xff] }
   0x5   :  { %2473 = vmatprep.subr.mxu0 %v2784_v0  ;;  %2456 = vmatprep.mubr.msk.f32.mxu0 %vm3596_vm2, %v2784_v0  ;;  %v37_v13 = vld [vmem:[%s3587_s1 + $0x40] sm:$0xf]  ;;  %v40_v14 = vld [vmem:[%s3587_s1 + $0x58] sm:$0xf]  ;;  %v403_v17 = vld [vmem:[%s3589_s2 + $0x8] sm:$0xff]  ;;  %v3093_v44 = vsub.s32 0, %v3085_v42 }
   0x6   :  { %2467 = vmatprep.mubr.msk.f32.mxu1 %vm3596_vm2, %v2784_v0  ;;  %2474 = vmatpush3.msk.msra.mxu0 %vm51_vm0, %v26_v1  ;;  %v402_v15 = vld [vmem:[%s3589_s2] sm:$0xff]  ;;  %v405_v16 = vld [vmem:[%s3589_s2 + $0x18] sm:$0xff]  ;;  %v404_v19 = vld [vmem:[%s3589_s2 + $0x10] sm:$0xf]  ;;  %v1566_v45 = vsub.s32 1, %v3085_v42  ;;  %v1596_v48 = vsub.s32 3, %v3085_v42 }
   0x7   :  { %2484 = vmatprep.subr.mxu1 %v2784_v0  ;;  %2495 = vmatprep.subr.mxu0 %v2784_v0  ;;  %v406_v18 = vld [vmem:[%s3589_s2 + $0x20] sm:$0xff]  ;;  %v407_v20 = vld [vmem:[%s3589_s2 + $0x28] sm:$0xf]  ;;  %v408_v21 = vld [vmem:[%s3589_s2 + $0x30] sm:$0xff]  ;;  %v1581_v49 = vsub.s32 2, %v3085_v42 }
   0x8   :  { %2457 = vmatmul.mubr.msk.f32.gmra.mrb[2].mxu0 %vm3594_vm1, %v30_v4  ;;  %2468 = vmatmul.mubr.msk.f32.gmra.mrb[2].mxu1 %vm3594_vm1, %v33_v5  ;;  %v411_v22 = vld [vmem:[%s3589_s2 + $0x48] sm:$0xff]  ;;  %v409_v23 = vld [vmem:[%s3589_s2 + $0x38] sm:$0xff]  ;;  %v412_v24 = vld [vmem:[%s3589_s2 + $0x50] sm:$0xff] }
   0x9   :  { %2459 = vmatprep.mubr.msk.f32.mxu0 %vm3596_vm2, %v2784_v0  ;;  %2470 = vmatprep.mubr.msk.f32.mxu1 %vm3596_vm2, %v2784_v0  ;;  %v410_v25 = vld [vmem:[%s3589_s2 + $0x40] sm:$0xf]  ;;  %v413_v26 = vld [vmem:[%s3589_s2 + $0x58] sm:$0xf]  ;;  %v774_v30 = vld [vmem:[%s3591_s3 + $0x8] sm:$0xff] }
   0xa   :  { %2485 = vmatpush3.msk.msra.mxu1 %vm51_vm0, %v26_v1  ;;  %v28_v27 = vld [vmem:[%s3590_s6] sm:$0x7]  ;;  %v776_v29 = vld [vmem:[%s3591_s3 + $0x18] sm:$0xff]  ;;  %v775_v32 = vld [vmem:[%s3591_s3 + $0x10] sm:$0xf] }
   0xb   :  { %2506 = vmatprep.subr.mxu1 %v2784_v0  ;;  %v773_v28 = vld [vmem:[%s3591_s3] sm:$0xff]  ;;  %v778_v33 = vld [vmem:[%s3591_s3 + $0x28] sm:$0xf]  ;;  %v779_v34 = vld [vmem:[%s3591_s3 + $0x30] sm:$0xff] }
   0xc   :  { %2460 = vmatmul.mubr.msk.f32.gmra.mrb[4].mxu0 %vm3594_vm1, %v31_v6  ;;  %2471 = vmatmul.mubr.msk.f32.gmra.mrb[4].mxu1 %vm3594_vm1, %v34_v7  ;;  %v777_v31 = vld [vmem:[%s3591_s3 + $0x20] sm:$0xff]  ;;  %v782_v35 = vld [vmem:[%s3591_s3 + $0x48] sm:$0xff]  ;;  %v780_v36 = vld [vmem:[%s3591_s3 + $0x38] sm:$0xff] }
   0xd   :  { %2475 = vmatprep.mubr.msk.f32.mxu0 %vm3596_vm2, %v2784_v0  ;;  %2486 = vmatprep.mubr.msk.f32.mxu1 %vm3596_vm2, %v2784_v0  ;;  %v783_v38 = vld [vmem:[%s3591_s3 + $0x50] sm:$0xff]  ;;  %v781_v39 = vld [vmem:[%s3591_s3 + $0x40] sm:$0xf]  ;;  %v784_v40 = vld [vmem:[%s3591_s3 + $0x58] sm:$0xf] }
   0xe   :  { %v3090_v43 = vld [vmem:[%s3592_s0] sm:$0xf]  ;;  %vm3125_vm3 = vmpackc.low %vm3594_vm1, %vm3594_vm1 }
   0xf   :  { %v1552_v46 = vrot.slane %v3090_v43, %v3093_v44  ;;  %v1567_v47 = vrot.slane %v3090_v43, %v1566_v45  ;;  %v1597_v50 = vrot.slane %v3090_v43, %v1596_v48  ;;  %v1582_v51 = vrot.slane %v3090_v43, %v1581_v49 }
  0x10   :  { %2476 = vmatmul.mubr.msk.f32.vlgmr.msra.gmra.mrb[6].mxu0 %vm3594_vm1, %v35_v8  ;;  %2487 = vmatmul.mubr.msk.f32.vlgmr.msra.gmra.mrb[6].mxu1 %vm3594_vm1, %v38_v9 }
  0x11   :  { %2478 = vmatprep.mubr.msk.f32.mxu0 %vm3596_vm2, %v2784_v0  ;;  %2489 = vmatprep.mubr.msk.f32.mxu1 %vm3596_vm2, %v2784_v0 }
  0x12   :  { %2496 = vmatpush3.msk.msra.mxu0 %vm51_vm0, %v27_v10  ;;  %2507 = vmatpush3.msk.msra.mxu1 %vm51_vm0, %v27_v10 }
  0x13   :  { %2517 = vmatprep.subr.mxu0 %v2784_v0  ;;  %2528 = vmatprep.subr.mxu1 %v2784_v0 }
  0x14   :  { %2479 = vmatmul.mubr.msk.f32.gmra.mrb[8].mxu0 %vm3594_vm1, %v36_v11  ;;  %2490 = vmatmul.mubr.msk.f32.gmra.mrb[8].mxu1 %vm3594_vm1, %v39_v12 }
  0x15   :  { %2481 = vmatprep.mubr.msk.f32.mxu0 %vm3596_vm2, %v2784_v0  ;;  %2492 = vmatprep.mubr.msk.f32.mxu1 %vm3596_vm2, %v2784_v0 }
  0x16   :  { %1554 = vbcast.lane.b32.xlu0 %v1552_v46, 256  ;;  %1558 = vbcast.lane.b32.xlu1 %v1552_v46, 264 }
  0x18   :  { %2482 = vmatmul.mubr.msk.f32.gmra.mrb[10].mxu0 %vm3594_vm1, %v37_v13  ;;  %2493 = vmatmul.mubr.msk.f32.gmra.mrb[10].mxu1 %vm3594_vm1, %v40_v14 }
  0x19   :  { %2497 = vmatprep.mubr.msk.f32.mxu0 %vm3596_vm2, %v2784_v0  ;;  %2508 = vmatprep.mubr.msk.f32.mxu1 %vm3596_vm2, %v2784_v0 }
  0x1a   :  { %1569 = vbcast.lane.b32.xlu0 %v1567_v47, 256  ;;  %1573 = vbcast.lane.b32.xlu1 %v1567_v47, 264 }
  0x1c   :  { %2498 = vmatmul.mubr.msk.f32.vlgmr.msra.gmra.mrb[12].mxu0 %vm3594_vm1, %v402_v15  ;;  %2509 = vmatmul.mubr.msk.f32.vlgmr.msra.gmra.mrb[12].mxu1 %vm3594_vm1, %v405_v16 }
  0x1d   :  { %2500 = vmatprep.mubr.msk.f32.mxu0 %vm3596_vm2, %v2784_v0  ;;  %2511 = vmatprep.mubr.msk.f32.mxu1 %vm3596_vm2, %v2784_v0 }
  0x1e   :  { %2518 = vmatpush3.msk.msra.mxu0 %vm51_vm0, %v27_v10  ;;  %2529 = vmatpush3.msk.msra.mxu1 %vm51_vm0, %v27_v10 }
  0x1f   :  { %2539 = vmatprep.subr.mxu0 %v2784_v0  ;;  %2550 = vmatprep.subr.mxu1 %v2784_v0 }
  0x20   :  { %2501 = vmatmul.mubr.msk.f32.gmra.mrb[14].mxu0 %vm3594_vm1, %v403_v17  ;;  %2512 = vmatmul.mubr.msk.f32.gmra.mrb[14].mxu1 %vm3594_vm1, %v406_v18 }
  0x21   :  { %2503 = vmatprep.mubr.msk.f32.mxu0 %vm3596_vm2, %v2784_v0  ;;  %2514 = vmatprep.mubr.msk.f32.mxu1 %vm3596_vm2, %v2784_v0 }
  0x22   :  { %1577 = vbcast.lane.b32.xlu1 %v1567_v47, 272  ;;  %1562 = vbcast.lane.b32.xlu0 %v1552_v46, 272 }
  0x24   :  { %2504 = vmatmul.mubr.msk.f32.gmra.mrb[16].mxu0 %vm3594_vm1, %v404_v19  ;;  %2515 = vmatmul.mubr.msk.f32.gmra.mrb[16].mxu1 %vm3594_vm1, %v407_v20 }
  0x25   :  { %2519 = vmatprep.mubr.msk.f32.mxu0 %vm3596_vm2, %v2784_v0  ;;  %2530 = vmatprep.mubr.msk.f32.mxu1 %vm3596_vm2, %v2784_v0 }
  0x26   :  { %1599 = vbcast.lane.b32.xlu1 %v1597_v50, 256  ;;  %1584 = vbcast.lane.b32.xlu0 %v1582_v51, 256 }
  0x28   :  { %2520 = vmatmul.mubr.msk.f32.vlgmr.msra.gmra.mrb[18].mxu0 %vm3594_vm1, %v408_v21  ;;  %2531 = vmatmul.mubr.msk.f32.vlgmr.msra.gmra.mrb[18].mxu1 %vm3594_vm1, %v411_v22 }
  0x29   :  { %2522 = vmatprep.mubr.msk.f32.mxu0 %vm3596_vm2, %v2784_v0  ;;  %2533 = vmatprep.mubr.msk.f32.mxu1 %vm3596_vm2, %v2784_v0 }
  0x2a   :  { %2540 = vmatpush3.msk.msra.mxu0 %vm51_vm0, %v28_v27  ;;  %2551 = vmatpush3.msk.msra.mxu1 %vm51_vm0, %v28_v27 }
  0x2b   :  { %2561 = vmatprep.subr.mxu0 %v2784_v0  ;;  %2572 = vmatprep.subr.mxu1 %v2784_v0 }
  0x2c   :  { %2523 = vmatmul.mubr.msk.f32.gmra.mrb[20].mxu0 %vm3594_vm1, %v409_v23  ;;  %2534 = vmatmul.mubr.msk.f32.gmra.mrb[20].mxu1 %vm3594_vm1, %v412_v24 }
  0x2d   :  { %2525 = vmatprep.mubr.msk.f32.mxu0 %vm3596_vm2, %v2784_v0  ;;  %2536 = vmatprep.mubr.msk.f32.mxu1 %vm3596_vm2, %v2784_v0 }
  0x2e   :  { %1603 = vbcast.lane.b32.xlu1 %v1597_v50, 264  ;;  %1588 = vbcast.lane.b32.xlu0 %v1582_v51, 264 }
  0x30   :  { %2526 = vmatmul.mubr.msk.f32.gmra.mrb[22].mxu0 %vm3594_vm1, %v410_v25  ;;  %2537 = vmatmul.mubr.msk.f32.gmra.mrb[22].mxu1 %vm3594_vm1, %v413_v26 }
  0x31   :  { %2541 = vmatprep.mubr.msk.f32.mxu0 %vm3596_vm2, %v2784_v0  ;;  %2552 = vmatprep.mubr.msk.f32.mxu1 %vm3596_vm2, %v2784_v0 }
  0x32   :  { %1607 = vbcast.lane.b32.xlu1 %v1597_v50, 272  ;;  %1592 = vbcast.lane.b32.xlu0 %v1582_v51, 272 }
  0x34   :  { %2542 = vmatmul.mubr.msk.f32.vlgmr.msra.gmra.mrb[24].mxu0 %vm3594_vm1, %v773_v28  ;;  %2553 = vmatmul.mubr.msk.f32.vlgmr.msra.gmra.mrb[24].mxu1 %vm3594_vm1, %v776_v29 }
  0x35   :  { %2544 = vmatprep.mubr.msk.f32.mxu0 %vm3596_vm2, %v2784_v0  ;;  %2562 = vmatpush3.msk.msra.mxu0 %vm51_vm0, %v28_v27 }
  0x36   :  { %2555 = vmatprep.mubr.msk.f32.mxu1 %vm3596_vm2, %v2784_v0  ;;  %2573 = vmatpush3.msk.msra.mxu1 %vm51_vm0, %v28_v27 }
  0x37   :  { %2703 = vmatprep.subr.bf16.mxu0 %v2786_v37  ;;  %2707 = vmatprep.subr.bf16.mxu1 %v2786_v37 }
  0x38   :  { %2545 = vmatmul.mubr.msk.f32.gmra.mrb[26].mxu0 %vm3594_vm1, %v774_v30  ;;  %2556 = vmatmul.mubr.msk.f32.gmra.mrb[26].mxu1 %vm3594_vm1, %v777_v31 }
  0x39   :  { %2547 = vmatprep.mubr.msk.f32.mxu0 %vm3596_vm2, %v2784_v0  ;;  %2558 = vmatprep.mubr.msk.f32.mxu1 %vm3596_vm2, %v2784_v0 }
  0x3c   :  { %2548 = vmatmul.mubr.msk.f32.gmra.mrb[28].mxu0 %vm3594_vm1, %v775_v32  ;;  %2559 = vmatmul.mubr.msk.f32.gmra.mrb[28].mxu1 %vm3594_vm1, %v778_v33 }
  0x3d   :  { %2563 = vmatprep.mubr.msk.f32.mxu0 %vm3596_vm2, %v2784_v0  ;;  %2574 = vmatprep.mubr.msk.f32.mxu1 %vm3596_vm2, %v2784_v0 }
  0x40   :  { %2564 = vmatmul.mubr.msk.f32.vlgmr.msra.gmra.mrb[30].mxu0 %vm3594_vm1, %v779_v34  ;;  %2575 = vmatmul.mubr.msk.f32.vlgmr.msra.gmra.mrb[30].mxu1 %vm3594_vm1, %v782_v35 }
  0x41   :  { %2566 = vmatprep.mubr.msk.f32.mxu0 %vm3596_vm2, %v2784_v0  ;;  %2577 = vmatprep.mubr.msk.f32.mxu1 %vm3596_vm2, %v2784_v0 }
  0x44   :  { %2567 = vmatmul.mubr.msk.f32.gmra.mrb[32].mxu0 %vm3594_vm1, %v780_v36  ;;  %2578 = vmatmul.mubr.msk.f32.gmra.mrb[32].mxu1 %vm3594_vm1, %v783_v38 }
  0x45   :  { %2569 = vmatprep.mubr.msk.f32.mxu0 %vm3596_vm2, %v2784_v0  ;;  %2580 = vmatprep.mubr.msk.f32.mxu1 %vm3596_vm2, %v2784_v0 }
  0x48   :  { %2570 = vmatmul.mubr.msk.f32.gmra.mrb[34].mxu0 %vm3594_vm1, %v781_v39  ;;  %2581 = vmatmul.mubr.msk.f32.gmra.mrb[34].mxu1 %vm3594_vm1, %v784_v40 }
  0x49   :  { %2589 = vmatprep.mubr.msk.f32.mxu0 %vm3596_vm2, %v2784_v0  ;;  %2604 = vmatprep.mubr.msk.f32.mxu1 %vm3596_vm2, %v2784_v0 }
  0x88   :  { %v1559_v19 = vpop.permute.xlu1 %1558 }
  0x89   :  { %vm1610_vm9 = vcmp.gt.f32.partialorder %v1559_v19, 0.5 }
  0xd7   :  { %v121_v52 = vpop.f32.mrb[0].mxu0  ;;  %v210_v53 = vpop.f32.mrb[0].mxu1 }
  0xd8   :  { %v2455_v54 = vpop.f32.mrb[1].mxu0  ;;  %v2466_v55 = vpop.f32.mrb[1].mxu1 }
  0xdb   :  { %v3103_v56 = vpop.f32.mrb[2].mxu0  ;;  %v3105_v57 = vpop.f32.mrb[2].mxu1 }
  0xdc   :  { %v2458_v58 = vpop.f32.mrb[3].mxu0  ;;  %v2469_v59 = vpop.f32.mrb[3].mxu1 }
  0xdf   :  { %v3107_v60 = vpop.f32.mrb[4].mxu0  ;;  %v3109_v61 = vpop.f32.mrb[4].mxu1 }
  0xe0   :  { %v2461_v62 = vpop.f32.mrb[5].mxu0  ;;  %v2472_v63 = vpop.f32.mrb[5].mxu1 }
  0xe3   :  { %v3111_v1 = vpop.f32.mrb[6].mxu0  ;;  %v3113_v2 = vpop.f32.mrb[6].mxu1 }
  0xe4   :  { %v2477_v3 = vpop.f32.mrb[7].mxu0  ;;  %v2488_v4 = vpop.f32.mrb[7].mxu1 }
  0xe7   :  { %v3115_v5 = vpop.f32.mrb[8].mxu0  ;;  %v3117_v6 = vpop.f32.mrb[8].mxu1 }
  0xe8   :  { %v2480_v7 = vpop.f32.mrb[9].mxu0  ;;  %v2491_v8 = vpop.f32.mrb[9].mxu1 }
  0xeb   :  { %v3119_v9 = vpop.f32.mrb[10].mxu0  ;;  %v3121_v10 = vpop.f32.mrb[10].mxu1 }
  0xec   :  { %v2483_v11 = vpop.f32.mrb[11].mxu0  ;;  %v2494_v12 = vpop.f32.mrb[11].mxu1 }
  0xef   :  { %v492_v13 = vpop.f32.mrb[12].mxu0  ;;  %v581_v14 = vpop.f32.mrb[12].mxu1 }
  0xf0   :  { %v2499_v15 = vpop.f32.mrb[13].mxu0  ;;  %v2510_v16 = vpop.f32.mrb[13].mxu1 }
  0xf3   :  { %v497_v17 = vpop.f32.mrb[14].mxu0  ;;  %v586_v18 = vpop.f32.mrb[14].mxu1 }
  0xf4   :  { %v2704_v20 = vpack.c.bf16 %v497_v17, %v492_v13  ;;  %v2708_v21 = vpack.c.bf16 %v586_v18, %v581_v14  ;;  %v2502_v22 = vpop.f32.mrb[15].mxu0  ;;  %v2513_v23 = vpop.f32.mrb[15].mxu1 }
  0xf5   :  { %v1555_v17 = vpop.permute.xlu0 %1554  ;;  %v2788_v22 = vmov 0  }
  0xf6   :  { %2706 = vmatpush3.bf16.xpose.msk.msra.mxu0 %vm3125_vm3, %v2704_v20  ;;  %2710 = vmatpush3.bf16.xpose.msk.msra.mxu1 %vm3125_vm3, %v2708_v21  ;;  %vm1609_vm8 = vcmp.gt.f32.partialorder %v1555_v17, 0.5 }
  0xf7   :  { %v502_v24 = vpop.f32.mrb[16].mxu0  ;;  %v591_v25 = vpop.f32.mrb[16].mxu1  ;;  %2587 = vmatprep.subr.mxu0 %v2784_v0  ;;  %2602 = vmatprep.subr.mxu1 %v2784_v0 }
  0xf8   :  { %v2505_v26 = vpop.f32.mrb[17].mxu0  ;;  %v2516_v27 = vpop.f32.mrb[17].mxu1 }
  0xf9   :  { %v1570_v21 = vpop.permute.xlu0 %1569 }
  0xfa   :  { %vm1612_vm11 = vcmp.gt.f32.partialorder %v1570_v21, 0.5 }
  0xfb   :  { %v670_v28 = vpop.f32.mrb[18].mxu0  ;;  %v759_v29 = vpop.f32.mrb[18].mxu1 }
  0xfc   :  { %v2521_v30 = vpop.f32.mrb[19].mxu0  ;;  %v2532_v31 = vpop.f32.mrb[19].mxu1 }
  0xfd   :  { %v1563_v26 = vpop.permute.xlu0 %1562 }
  0xfe   :  { %2588 = vmatpush3.xpose.msk.msra.mxu0 %vm3594_vm1, %v502_v24  ;;  %2603 = vmatpush3.xpose.msk.msra.mxu1 %vm3594_vm1, %v591_v25  ;;  %v1574_v24 = vpop.permute.xlu1 %1573 }
  0xff   :  { %v675_v32 = vpop.f32.mrb[20].mxu0  ;;  %v764_v33 = vpop.f32.mrb[20].mxu1  ;;  %2711 = vmatprep.subr.bf16.mxu0 %v2786_v37  ;;  %2715 = vmatprep.subr.bf16.mxu1 %v2786_v37  ;;  %vm1613_vm0 = vcmp.gt.f32.partialorder %v1574_v24, 0.5 }
 0x100   :  { %v2712_v34 = vpack.c.bf16 %v675_v32, %v670_v28  ;;  %v2716_v35 = vpack.c.bf16 %v764_v33, %v759_v29  ;;  %v2524_v36 = vpop.f32.mrb[21].mxu0  ;;  %v2535_v38 = vpop.f32.mrb[21].mxu1 }
 0x101   :  { %2590 = vmatmul.mubr.msk.f32.vlgmr.msra.gmra.mrb[36].mxu0 %vm3594_vm1, %v121_v52  ;;  %2605 = vmatmul.mubr.msk.f32.vlgmr.msra.gmra.mrb[36].mxu1 %vm3594_vm1, %v210_v53  ;;  %v1585_v33 = vpop.permute.xlu0 %1584 }
 0x102   :  { %2714 = vmatpush3.bf16.xpose.msk.msra.mxu0 %vm3125_vm3, %v2712_v34  ;;  %2718 = vmatpush3.bf16.xpose.msk.msra.mxu1 %vm3125_vm3, %v2716_v35  ;;  %v1578_v30 = vpop.permute.xlu1 %1577  ;;  %v3233_v35 = vadd.s32 8, %v3085_v42 }
 0x103   :  { %2592 = vmatprep.mubr.msk.f32.mxu0 %vm3596_vm2, %v2784_v0  ;;  %2607 = vmatprep.mubr.msk.f32.mxu1 %vm3596_vm2, %v2784_v0  ;;  %v680_v39 = vpop.f32.mrb[22].mxu0  ;;  %v769_v40 = vpop.f32.mrb[22].mxu1 }
 0x104   :  { %2617 = vmatprep.subr.mxu0 %v2784_v0  ;;  %2632 = vmatprep.subr.mxu1 %v2784_v0  ;;  %v2527_v45 = vpop.f32.mrb[23].mxu0  ;;  %v2538_v46 = vpop.f32.mrb[23].mxu1 }
 0x105   :  { %2593 = vmatmul.mubr.msk.f32.gmra.mrb[38].mxu0 %vm3594_vm1, %v3103_v56  ;;  %2608 = vmatmul.mubr.msk.f32.gmra.mrb[38].mxu1 %vm3594_vm1, %v3105_v57  ;;  %v3263_v46 = vadd.s32 16, %v3085_v42 }
 0x106   :  { %2595 = vmatprep.mubr.msk.f32.mxu0 %vm3596_vm2, %v2784_v0  ;;  %2610 = vmatprep.mubr.msk.f32.mxu1 %vm3596_vm2, %v2784_v0  ;;  %v1600_v36 = vpop.permute.xlu1 %1599 }
 0x107   :  { %v863_v47 = vpop.f32.mrb[24].mxu0  ;;  %v952_v50 = vpop.f32.mrb[24].mxu1 }
 0x108   :  { %v2543_v48 = vpop.f32.mrb[25].mxu0  ;;  %v2554_v52 = vpop.f32.mrb[25].mxu1 }
 0x109   :  { %2596 = vmatmul.mubr.msk.f32.gmra.mrb[40].mxu0 %vm3594_vm1, %v3107_v60  ;;  %2611 = vmatmul.mubr.msk.f32.gmra.mrb[40].mxu1 %vm3594_vm1, %v3109_v61 }
 0x10a   :  { %2618 = vmatpush3.xpose.msk.msra.mxu0 %vm3594_vm1, %v680_v39  ;;  %2633 = vmatpush3.xpose.msk.msra.mxu1 %vm3594_vm1, %v769_v40 }
 0x10b   :  { %2619 = vmatprep.mubr.msk.f32.mxu0 %vm3596_vm2, %v2784_v0  ;;  %2634 = vmatprep.mubr.msk.f32.mxu1 %vm3596_vm2, %v2784_v0  ;;  %v868_v49 = vpop.f32.mrb[26].mxu0  ;;  %v957_v54 = vpop.f32.mrb[26].mxu1 }
 0x10c   :  { %2719 = vmatprep.subr.bf16.mxu0 %v2786_v37  ;;  %2722 = vmatprep.subr.bf16.mxu1 %v2786_v37  ;;  %v2720_v51 = vpack.c.bf16 %v868_v49, %v863_v47  ;;  %v2546_v53 = vpop.f32.mrb[27].mxu0  ;;  %v2723_v56 = vpack.c.bf16 %v957_v54, %v952_v50  ;;  %v2557_v58 = vpop.f32.mrb[27].mxu1 }
 0x10d   :  { %2620 = vmatmul.mubr.msk.f32.vlgmr.msra.gmra.mrb[42].mxu0 %vm3594_vm1, %v3111_v1  ;;  %2635 = vmatmul.mubr.msk.f32.vlgmr.msra.gmra.mrb[42].mxu1 %vm3594_vm1, %v3113_v2  ;;  %v1589_v47 = vpop.permute.xlu0 %1588 }
 0x10e   :  { %2622 = vmatprep.mubr.msk.f32.mxu0 %vm3596_vm2, %v2784_v0  ;;  %2637 = vmatprep.mubr.msk.f32.mxu1 %vm3596_vm2, %v2784_v0 }
 0x10f   :  { %2721 = vmatpush3.bf16.msra.mxu0 %v2720_v51  ;;  %v873_v55 = vpop.f32.mrb[28].mxu0  ;;  %2724 = vmatpush3.bf16.msra.mxu1 %v2723_v56  ;;  %v962_v60 = vpop.f32.mrb[28].mxu1 }
 0x110   :  { %2647 = vmatprep.subr.mxu0 %v2784_v0  ;;  %v2549_v57 = vpop.f32.mrb[29].mxu0  ;;  %2662 = vmatprep.subr.mxu1 %v2784_v0  ;;  %v2560_v62 = vpop.f32.mrb[29].mxu1 }
 0x111   :  { %2623 = vmatmul.mubr.msk.f32.gmra.mrb[44].mxu0 %vm3594_vm1, %v3115_v5  ;;  %2638 = vmatmul.mubr.msk.f32.gmra.mrb[44].mxu1 %vm3594_vm1, %v3117_v6  ;;  %v1604_v62 = vpop.permute.xlu1 %1603  ;;  %v1593_v19 = vpop.permute.xlu0 %1592 }
 0x112   :  { %2625 = vmatprep.mubr.msk.f32.mxu0 %vm3596_vm2, %v2784_v0  ;;  %2640 = vmatprep.mubr.msk.f32.mxu1 %vm3596_vm2, %v2784_v0 }
 0x113   :  { %2648 = vmatpush3.msk.msra.mxu0 %vm3595_vm4, %v873_v55  ;;  %v3197_v59 = vpop.f32.mrb[30].mxu0  ;;  %2663 = vmatpush3.msk.msra.mxu1 %vm3595_vm4, %v962_v60  ;;  %v3202_v63 = vpop.f32.mrb[30].mxu1 }
 0x114   :  { %2725 = vmatprep.subr.bf16.mxu0 %v2786_v37  ;;  %v2565_v61 = vpop.f32.mrb[31].mxu0  ;;  %2728 = vmatprep.subr.bf16.mxu1 %v2786_v37  ;;  %v2576_v2 = vpop.f32.mrb[31].mxu1  ;;  %v2787_v37 = vmov 1966171168  }
 0x115   :  { %2626 = vmatmul.mubr.msk.f32.gmra.mrb[46].mxu0 %vm3594_vm1, %v3119_v9  ;;  %2641 = vmatmul.mubr.msk.f32.gmra.mrb[46].mxu1 %vm3594_vm1, %v3121_v10  ;;  %v1623_v12 = vunpack.c.l.s4 %v2787_v37  ;;  %vm1614_vm1 = vcmp.gt.f32.partialorder %v1578_v30, 0.5  ;;  %v1608_v31 = vpop.permute.xlu1 %1607 }
 0x116   :  { %2649 = vmatprep.mubr.msk.f32.mxu0 %vm3596_vm2, %v2784_v0  ;;  %2664 = vmatprep.mubr.msk.f32.mxu1 %vm3596_vm2, %v2784_v0 }
 0x117   :  { %v3205_v1 = vpop.f32.mrb[32].mxu0  ;;  %v3209_v5 = vpop.f32.mrb[32].mxu1  ;;  %v1624_v13 = vunpack.c.0.s8 %v1623_v12 }
 0x118   :  { %v2726_v3 = vpack.c.bf16 %v3205_v1, %v3197_v59  ;;  %v2568_v4 = vpop.f32.mrb[33].mxu0  ;;  %v2729_v6 = vpack.c.bf16 %v3209_v5, %v3202_v63  ;;  %v2579_v7 = vpop.f32.mrb[33].mxu1 }
 0x119   :  { %v1627_v14 = vsub.s32 %v1624_v13, %v3085_v42 }
 0x11b   :  { %v3213_v8 = vpop.f32.mrb[34].mxu0  ;;  %v3215_v9 = vpop.f32.mrb[34].mxu1  ;;  %v1628_v15 = vrot.slane %v3090_v43, %v1627_v14  ;;  %v3222_v43 = vand.u32 127, %v1549_v41 }
 0x11c   :  { %v2571_v10 = vpop.f32.mrb[35].mxu0  ;;  %v2582_v11 = vpop.f32.mrb[35].mxu1 }
 0x11d   :  { %v1629_v16 = vcombine.high %v1628_v15, %v1628_v15  ;;  %v1636_v18 = vrot.slane %v1628_v15, %v1627_v14  ;;  %vm1720_vm14 = vcmp.ne.s32.totalorder %v3085_v42, %v3222_v43 }
 0x11f   :  { %v1643_v20 = vrot.slane %v1629_v16, %v1627_v14  ;;  %vm1650_vm5 = vcmp.gt.f32.partialorder %v1636_v18, 0.5  ;;  %v1644_v29 = vcombine.high %v1636_v18, %v1636_v18 }
 0x120   :  { %v1678_v23 = vsel %vm1650_vm5, 1, %v2788_v22 }
 0x121   :  { %vm1651_vm6 = vcmp.gt.f32.partialorder %v1643_v20, 0.5  ;;  %v1685_v27 = vrot.slane %v1678_v23, %v3093_v44  ;;  %v1645_v32 = vcombine.high %v1643_v20, %v1643_v20  ;;  %vm1652_vm12 = vcmp.gt.f32.partialorder %v1644_v29, 0.5 }
 0x122   :  { %v1679_v25 = vsel %vm1651_vm6, 1, %v2788_v22  ;;  %v1680_v38 = vsel %vm1652_vm12, 1, %v2788_v22 }
 0x123   :  { %v1689_v28 = vrot.slane %v1679_v25, %v3093_v44  ;;  %vm3224_vm7 = vcmp.eq.s32.totalorder %v1685_v27, 1  ;;  %vm1653_vm3 = vcmp.gt.f32.partialorder %v1645_v32, 0.5  ;;  %v1693_v50 = vrot.slane %v1680_v38, %v3093_v44 }
 0x124   :  { %vm1702_vm13 = vmand %vm1609_vm8, %vm3224_vm7  ;;  %vm1721_vm8 = vcmp.ne.s32.totalorder %v3233_v35, %v3222_v43  ;;  %v1681_v45 = vsel %vm1653_vm3, 1, %v2788_v22 }
 0x125   :  { %vm3228_vm10 = vcmp.eq.s32.totalorder %v1689_v28, 1  ;;  %vm3241_vm15 = vmand %vm1610_vm9, %vm3224_vm7  ;;  %v1697_v57 = vrot.slane %v1681_v45, %v3093_v44 }
 0x126   :  { %vm1705_vm5 = vmand %vm1612_vm11, %vm3228_vm10  ;;  %vm1747_vm11 = vcmask 162816  }
 0x127   :  { %vm3250_vm6 = vmand %vm1702_vm13, %vm1720_vm14  ;;  %vm1611_vm13 = vcmp.gt.f32.partialorder %v1563_v26, 0.5 }
 0x128   :  { %vm3258_vm9 = vmand %vm1613_vm0, %vm3228_vm10 }
 0x129   :  { %vm1726_vm12 = vmand %vm1705_vm5, %vm1720_vm14 }
 0x12a   :  { %vm3274_vm0 = vmand %vm3241_vm15, %vm1721_vm8 }
 0x12b   :  { %vm3281_vm3 = vmand %vm1614_vm1, %vm3228_vm10  ;;  %vm1722_vm1 = vcmp.ne.s32.totalorder %v3263_v46, %v3222_v43  ;;  %vm3304_vm10 = vcmp.eq.s32.totalorder %v1693_v50, 1 }
 0x12c   :  { %vm3294_vm15 = vmand %vm1611_vm13, %vm3224_vm7  ;;  %vm1615_vm7 = vcmp.gt.f32.partialorder %v1585_v33, 0.5 }
 0x12d   :  { %vm1727_vm5 = vmand %vm3258_vm9, %vm1721_vm8  ;;  %vm1616_vm9 = vcmp.gt.f32.partialorder %v1589_v47, 0.5 }
 0x12e   :  { %vm3322_vm13 = vmand %vm3294_vm15, %vm1722_vm1  ;;  %vm1754_vm15 = vcmask 158720  }
 0x12f   :  { %vm3337_vm4 = vmand %vm3281_vm3, %vm1722_vm1 }
 0x130   :  { %vm3352_vm2 = vmand %vm1616_vm9, %vm3304_vm10  ;;  %vm1620_vm9 = vcmp.gt.f32.partialorder %v1608_v31, 0.5 }
 0x1d4   :  { %v1228_v48 = vpop.f32.mrb[36].mxu0  ;;  %v1326_v49 = vpop.f32.mrb[36].mxu1 }
 0x1d5   :  { %v1536_v51 = vmul.f32 0.57735026, %v1228_v48  ;;  %v1539_v52 = vmul.f32 0.57735026, %v1326_v49  ;;  %v2591_v53 = vpop.f32.mrb[37].mxu0  ;;  %v2606_v54 = vpop.f32.mrb[37].mxu1 }
 0x1d7   :  { %v3288_v58 = vsel %vm3250_vm6, %v1536_v51, -3.4028235e+38  ;;  %v3290_v60 = vsel %vm1726_vm12, %v1539_v52, -3.4028235e+38  ;;  %vm3313_vm6 = vcmp.eq.s32.totalorder %v1697_v57, 1  ;;  %vm1618_vm12 = vcmp.gt.f32.partialorder %v1600_v36, 0.5 }
 0x1d8   :  { %v1233_v2 = vpop.f32.mrb[38].mxu0  ;;  %v1331_v4 = vpop.f32.mrb[38].mxu1  ;;  %v1748_v44 = vsel %vm1747_vm11, %v3288_v58, -inf  ;;  %v1758_v7 = vsel %vm1747_vm11, %v3290_v60, -inf  ;;  %vm1711_vm3 = vmand %vm1618_vm12, %vm3313_vm6  ;;  %vm1617_vm12 = vcmp.gt.f32.partialorder %v1593_v19, 0.5 }
 0x1d9   :  { %v1537_v11 = vmul.f32 0.57735026, %v1233_v2  ;;  %v1540_v37 = vmul.f32 0.57735026, %v1331_v4  ;;  %v2594_v12 = vpop.f32.mrb[39].mxu0  ;;  %v2609_v13 = vpop.f32.mrb[39].mxu1  ;;  %1749 = vmax.xlane.f32.xlu0 %v1748_v44  ;;  %1759 = vmax.xlane.f32.xlu1 %v1758_v7 }
 0x1db   :  { %v3328_v16 = vsel %vm3274_vm0, %v1537_v11, -3.4028235e+38  ;;  %v3330_v17 = vsel %vm1727_vm5, %v1540_v37, -3.4028235e+38  ;;  %vm1708_vm0 = vmand %vm1615_vm7, %vm3304_vm10  ;;  %vm1619_vm5 = vcmp.gt.f32.partialorder %v1604_v62, 0.5 }
 0x1dc   :  { %v1238_v20 = vpop.f32.mrb[40].mxu0  ;;  %v1336_v21 = vpop.f32.mrb[40].mxu1  ;;  %v1751_v22 = vsel %vm1747_vm11, %v3328_v16, -inf  ;;  %vm3367_vm7 = vmand %vm1708_vm0, %vm1720_vm14  ;;  %v1761_v34 = vsel %vm1747_vm11, %v3330_v17, -inf }
 0x1dd   :  { %v1538_v23 = vmul.f32 0.57735026, %v1238_v20  ;;  %v1541_v24 = vmul.f32 0.57735026, %v1336_v21  ;;  %v2597_v25 = vpop.f32.mrb[41].mxu0  ;;  %v2612_v26 = vpop.f32.mrb[41].mxu1  ;;  %1752 = vmax.xlane.f32.xlu0 %v1751_v22  ;;  %vm3383_vm0 = vmand %vm1617_vm12, %vm3304_vm10 }
 0x1df   :  { %v3358_v28 = vsel %vm3322_vm13, %v1538_v23, -3.4028235e+38  ;;  %v3362_v29 = vsel %vm3337_vm4, %v1541_v24, -3.4028235e+38  ;;  %vm1732_vm4 = vmand %vm1711_vm3, %vm1720_vm14 }
 0x1e0   :  { %v1424_v32 = vpop.f32.mrb[42].mxu0  ;;  %v1522_v33 = vpop.f32.mrb[42].mxu1  ;;  %v1755_v41 = vsel %vm1754_vm15, %v3358_v28, -inf  ;;  %vm1712_vm13 = vmand %vm1619_vm5, %vm3313_vm6  ;;  %v1764_v50 = vsel %vm1754_vm15, %v3362_v29, -inf  ;;  %vm3633_vm5 = vcmask 23552  }
 0x1e1   :  { %v1542_v36 = vmul.f32 0.57735026, %v1424_v32  ;;  %v1545_v38 = vmul.f32 0.57735026, %v1522_v33  ;;  %v2621_v39 = vpop.f32.mrb[43].mxu0  ;;  %v2636_v40 = vpop.f32.mrb[43].mxu1  ;;  %1762 = vmax.xlane.f32.xlu0 %v1761_v34  ;;  %1756 = vmax.xlane.f32.xlu1 %v1755_v41  ;;  %vm1730_vm14 = vmand %vm3352_vm2, %vm1721_vm8 }
 0x1e2   :  { %vm1733_vm10 = vmand %vm1712_vm13, %vm1721_vm8 }
 0x1e3   :  { %v1741_v42 = vsel %vm3367_vm7, %v1542_v36, -3.4028235e+38  ;;  %v3389_v47 = vsel %vm1732_vm4, %v1545_v38, -3.4028235e+38  ;;  %vm1713_vm2 = vmand %vm1620_vm9, %vm3313_vm6  ;;  %vm3631_vm6 = vcmask 1043456  }
 0x1e4   :  { %v1429_v48 = vpop.f32.mrb[44].mxu0  ;;  %v1527_v49 = vpop.f32.mrb[44].mxu1  ;;  %v1767_v51 = vsel %vm1747_vm11, %v1741_v42, -inf  ;;  %vm1731_vm3 = vmand %vm3383_vm0, %vm1722_vm1  ;;  %v1776_v62 = vsel %vm1747_vm11, %v3389_v47, -inf }
 0x1e5   :  { %v1543_v52 = vmul.f32 0.57735026, %v1429_v48  ;;  %v1546_v53 = vmul.f32 0.57735026, %v1527_v49  ;;  %v2624_v54 = vpop.f32.mrb[45].mxu0  ;;  %v2639_v55 = vpop.f32.mrb[45].mxu1  ;;  %1765 = vmax.xlane.f32.xlu0 %v1764_v50  ;;  %1768 = vmax.xlane.f32.xlu1 %v1767_v51  ;;  %vm1734_vm8 = vmand %vm1713_vm2, %vm1722_vm1 }
 0x1e6   :  { %vm3630_vm1 = vmmov 0   ;;  %vm3634_vm7 = vmmov %vm3633_vm5 }
 0x1e7   :  { %v1742_v56 = vsel %vm1730_vm14, %v1543_v52, -3.4028235e+38  ;;  %v3405_v57 = vsel %vm1733_vm10, %v1546_v53, -3.4028235e+38  ;;  %vm3635_vm12 = vmmov %vm3633_vm5 }
 0x1e8   :  { %v1434_v35 = vpop.f32.mrb[46].mxu0  ;;  %v1532_v61 = vpop.f32.mrb[46].mxu1  ;;  %v1770_v2 = vsel %vm1747_vm11, %v1742_v56, -inf  ;;  %v1779_v12 = vsel %vm1747_vm11, %v3405_v57, -inf  ;;  %vm3636_vm4 = vmmov %vm3633_vm5 }
 0x1e9   :  { %v1544_v4 = vmul.f32 0.57735026, %v1434_v35  ;;  %v1547_v44 = vmul.f32 0.57735026, %v1532_v61  ;;  %v2627_v7 = vpop.f32.mrb[47].mxu0  ;;  %v2642_v10 = vpop.f32.mrb[47].mxu1  ;;  %1777 = vmax.xlane.f32.xlu0 %v1776_v62  ;;  %1771 = vmax.xlane.f32.xlu1 %v1770_v2  ;;  %vm3637_vm13 = vmmov %vm3636_vm4 }
 0x1ea   :  { %vm3638_vm9 = vmmov %vm3636_vm4 }
 0x1eb   :  { %v1743_v11 = vsel %vm1731_vm3, %v1544_v4, -3.4028235e+38  ;;  %v3418_v37 = vsel %vm1734_vm8, %v1547_v44, -3.4028235e+38  ;;  %vm3639_vm0 = vmmov %vm3636_vm4 }
 0x1ec   :  { %v1773_v13 = vsel %vm1754_vm15, %v1743_v11, -inf  ;;  %v1782_v43 = vsel %vm1754_vm15, %v3418_v37, -inf  ;;  %vm3640_vm14 = vmmov %vm3639_vm0 }
 0x1ed   :  { %1780 = vmax.xlane.f32.xlu0 %v1779_v12  ;;  %1774 = vmax.xlane.f32.xlu1 %v1773_v13 }
 0x1f1   :  { %1783 = vmax.xlane.f32.xlu0 %v1782_v43 }
 0x266   :  { %v1760_v46 = vpop.xlane.xlu1 %1759  ;;  %v1750_v14 = vpop.xlane.xlu0 %1749 }
 0x267   :  { %v1788_v15 = vsub.f32 %v3290_v60, %v1760_v46  ;;  %v1785_v18 = vsub.f32 %v3288_v58, %v1750_v14 }
 0x269   :  { %v1803_v19 = vmul.f32 1.442695, %v1788_v15  ;;  %v1797_v20 = vmul.f32 1.442695, %v1785_v18 }
 0x26a   :  { %v1753_v21 = vpop.xlane.xlu0 %1752 }
 0x26b   :  { %2736 = vpow2.f32 %v1803_v19  ;;  %v1786_v22 = vsub.f32 %v3328_v16, %v1753_v21 }
 0x26c   :  { %2738 = vpow2.f32 %v1797_v20 }
 0x26d   :  { %v1799_v23 = vmul.f32 1.442695, %v1786_v22 }
 0x26e   :  { %v1757_v24 = vpop.xlane.xlu1 %1756  ;;  %v1763_v25 = vpop.xlane.xlu0 %1762 }
 0x26f   :  { %2740 = vpow2.f32 %v1799_v23  ;;  %v1787_v26 = vsub.f32 %v3358_v28, %v1757_v24  ;;  %v1789_v27 = vsub.f32 %v3330_v17, %v1763_v25 }
 0x271   :  { %v1801_v30 = vmul.f32 1.442695, %v1787_v26  ;;  %v1805_v31 = vmul.f32 1.442695, %v1789_v27 }
 0x272   :  { %v1769_v60 = vpop.xlane.xlu1 %1768  ;;  %v1766_v32 = vpop.xlane.xlu0 %1765 }
 0x273   :  { %2742 = vpow2.f32 %v1801_v30  ;;  %v1791_v58 = vsub.f32 %v1741_v42, %v1769_v60  ;;  %v1790_v33 = vsub.f32 %v3362_v29, %v1766_v32 }
 0x274   :  { %2744 = vpow2.f32 %v1805_v31 }
 0x275   :  { %v3431_v34 = vpop.eup %2736  ;;  %v1809_v16 = vmul.f32 1.442695, %v1791_v58  ;;  %v1807_v41 = vmul.f32 1.442695, %v1790_v33 }
 0x276   :  { %v3433_v36 = vpop.eup %2738  ;;  %v1772_v38 = vpop.xlane.xlu1 %1771  ;;  %v1830_v17 = vsel %vm1747_vm11, %v3431_v34, 0.0 }
 0x277   :  { %v1778_v39 = vpop.xlane.xlu0 %1777  ;;  %2746 = vpow2.f32 %v1809_v16  ;;  %v1792_v28 = vsub.f32 %v1742_v56, %v1772_v38  ;;  %1831 = vadd.xlane.f32.xlu0 %v1830_v17  ;;  %v1821_v29 = vsel %vm1747_vm11, %v3433_v36, 0.0 }
 0x278   :  { %v1794_v40 = vsub.f32 %v3389_v47, %v1778_v39  ;;  %2748 = vpow2.f32 %v1807_v41  ;;  %1822 = vadd.xlane.f32.xlu1 %v1821_v29 }
 0x279   :  { %v3440_v45 = vpop.eup %2740  ;;  %v1811_v42 = vmul.f32 1.442695, %v1792_v28 }
 0x27a   :  { %v1815_v48 = vmul.f32 1.442695, %v1794_v40  ;;  %v1775_v49 = vpop.xlane.xlu1 %1774  ;;  %v1824_v51 = vsel %vm1747_vm11, %v3440_v45, 0.0 }
 0x27b   :  { %v1781_v50 = vpop.xlane.xlu0 %1780  ;;  %2750 = vpow2.f32 %v1811_v42  ;;  %v1793_v52 = vsub.f32 %v1743_v11, %v1775_v49 }
 0x27c   :  { %v1795_v53 = vsub.f32 %v3405_v57, %v1781_v50  ;;  %2752 = vpow2.f32 %v1815_v48  ;;  %1825 = vadd.xlane.f32.xlu1 %v1824_v51 }
 0x27d   :  { %v3445_v47 = vpop.eup %2742  ;;  %v1813_v54 = vmul.f32 1.442695, %v1793_v52 }
 0x27e   :  { %v1817_v55 = vmul.f32 1.442695, %v1795_v53  ;;  %v3447_v56 = vpop.eup %2744  ;;  %v1827_v61 = vsel %vm1754_vm15, %v3445_v47, 0.0 }
 0x27f   :  { %v1784_v35 = vpop.xlane.xlu0 %1783  ;;  %2754 = vpow2.f32 %v1813_v54  ;;  %v1833_v2 = vsel %vm1747_vm11, %v3447_v56, 0.0 }
 0x280   :  { %v1796_v62 = vsub.f32 %v3418_v37, %v1784_v35  ;;  %2756 = vpow2.f32 %v1817_v55  ;;  %1828 = vadd.xlane.f32.xlu1 %v1827_v61  ;;  %1834 = vadd.xlane.f32.xlu0 %v1833_v2 }
 0x281   :  { %v3454_v57 = vpop.eup %2746 }
 0x282   :  { %v1819_v4 = vmul.f32 1.442695, %v1796_v62  ;;  %v3456_v44 = vpop.eup %2748  ;;  %v1839_v7 = vsel %vm1747_vm11, %v3454_v57, 0.0 }
 0x283   :  { %v1836_v10 = vsel %vm1754_vm15, %v3456_v44, 0.0 }
 0x284   :  { %2758 = vpow2.f32 %v1819_v4  ;;  %1840 = vadd.xlane.f32.xlu1 %v1839_v7  ;;  %1837 = vadd.xlane.f32.xlu0 %v1836_v10 }
 0x285   :  { %v3462_v11 = vpop.eup %2750 }
 0x286   :  { %v3464_v37 = vpop.eup %2752  ;;  %v1842_v12 = vsel %vm1747_vm11, %v3462_v11, 0.0 }
 0x287   :  { %v1848_v13 = vsel %vm1747_vm11, %v3464_v37, 0.0 }
 0x288   :  { %1843 = vadd.xlane.f32.xlu1 %v1842_v12  ;;  %1849 = vadd.xlane.f32.xlu0 %v1848_v13 }
 0x289   :  { %v3470_v43 = vpop.eup %2754 }
 0x28a   :  { %v3472_v46 = vpop.eup %2756  ;;  %v1845_v14 = vsel %vm1754_vm15, %v3470_v43, 0.0 }
 0x28b   :  { %v1851_v15 = vsel %vm1747_vm11, %v3472_v46, 0.0 }
 0x28c   :  { %1846 = vadd.xlane.f32.xlu1 %v1845_v14  ;;  %1852 = vadd.xlane.f32.xlu0 %v1851_v15 }
 0x28e   :  { %v3478_v18 = vpop.eup %2758 }
 0x28f   :  { %v1854_v19 = vsel %vm1754_vm15, %v3478_v18, 0.0  ;;  %vm3632_vm15 = vmmov %vm3631_vm6 }
 0x290   :  { %1855 = vadd.xlane.f32.xlu0 %v1854_v19 }
 0x304   :  { %v1832_v20 = vpop.xlane.xlu0 %1831 }
 0x305   :  { %v1823_v21 = vpop.xlane.xlu1 %1822  ;;  %2760 = vrcp.f32 %v1832_v20 }
 0x306   :  { %2762 = vrcp.f32 %v1823_v21 }
 0x309   :  { %v1826_v22 = vpop.xlane.xlu1 %1825 }
 0x30a   :  { %2764 = vrcp.f32 %v1826_v22 }
 0x30d   :  { %v1829_v23 = vpop.xlane.xlu1 %1828  ;;  %v1835_v24 = vpop.xlane.xlu0 %1834 }
 0x30e   :  { %2766 = vrcp.f32 %v1829_v23 }
 0x30f   :  { %v2761_v25 = vpop.eup %2760  ;;  %2768 = vrcp.f32 %v1835_v24 }
 0x310   :  { %v2763_v26 = vpop.eup %2762  ;;  %v1864_v27 = vmul.f32 %v2761_v25, %v3431_v34 }
 0x311   :  { %v1858_v30 = vmul.f32 %v2763_v26, %v3433_v36  ;;  %v1841_v31 = vpop.xlane.xlu1 %1840  ;;  %v1838_v60 = vpop.xlane.xlu0 %1837 }
 0x312   :  { %2770 = vrcp.f32 %v1841_v31  ;;  %2665 = vmatmul.mubr.msk.f32.vlgmr.msra.gmra.mrb[48].mxu1 %vm1747_vm11, %v1864_v27 }
 0x313   :  { %2772 = vrcp.f32 %v1838_v60  ;;  %2650 = vmatmul.mubr.msk.f32.vlgmr.msra.gmra.mrb[48].mxu0 %vm1747_vm11, %v1858_v30  ;;  %2730 = vmatpush3.bf16.msra.mxu1 %v2729_v6 }
 0x314   :  { %v2765_v32 = vpop.eup %2764  ;;  %2727 = vmatpush3.bf16.msra.mxu0 %v2726_v3  ;;  %2652 = vmatprep.mubr.msk.f32.mxu0 %vm3630_vm1, %v2784_v0 }
 0x315   :  { %v1844_v58 = vpop.xlane.xlu1 %1843  ;;  %v1850_v33 = vpop.xlane.xlu0 %1849  ;;  %2677 = vmatprep.subr.mxu0 %v2784_v0  ;;  %2692 = vmatprep.subr.mxu1 %v2784_v0  ;;  %v1860_v34 = vmul.f32 %v2765_v32, %v3440_v45 }
 0x316   :  { %2774 = vrcp.f32 %v1844_v58  ;;  %2667 = vmatprep.mubr.msk.f32.mxu1 %vm3630_vm1, %v2784_v0 }
 0x317   :  { %2776 = vrcp.f32 %v1850_v33  ;;  %2653 = vmatmul.mubr.msk.f32.gmra.mrb[50].mxu0 %vm1747_vm11, %v1860_v34  ;;  %2693 = vmatpush3.msk.msra.mxu1 %vm3631_vm6, %v3215_v9 }
 0x318   :  { %v2767_v59 = vpop.eup %2766  ;;  %2678 = vmatpush3.msk.msra.mxu0 %vm3632_vm15, %v3213_v8  ;;  %2655 = vmatprep.mubr.msk.f32.mxu0 %vm3630_vm1, %v2784_v0 }
 0x319   :  { %v2769_v63 = vpop.eup %2768  ;;  %v1847_v1 = vpop.xlane.xlu1 %1846  ;;  %v1862_v5 = vmul.f32 %v2767_v59, %v3445_v47 }
 0x31a   :  { %v1853_v3 = vpop.xlane.xlu0 %1852  ;;  %2778 = vrcp.f32 %v1847_v1  ;;  %v1866_v6 = vmul.f32 %v2769_v63, %v3447_v56 }
 0x31b   :  { %2780 = vrcp.f32 %v1853_v3  ;;  %2656 = vmatmul.mubr.msk.f32.gmra.mrb[52].mxu0 %vm1747_vm11, %v1862_v5 }
 0x31c   :  { %v2771_v16 = vpop.eup %2770  ;;  %2668 = vmatmul.mubr.msk.f32.gmra.mrb[50].mxu1 %vm1747_vm11, %v1866_v6  ;;  %2679 = vmatprep.mubr.msk.f32.mxu0 %vm3630_vm1, %v2784_v0 }
 0x31d   :  { %v2773_v8 = vpop.eup %2772  ;;  %v1870_v9 = vmul.f32 %v2771_v16, %v3454_v57  ;;  %2670 = vmatprep.mubr.msk.f32.mxu1 %vm3630_vm1, %v2784_v0 }
 0x31e   :  { %v1856_v41 = vpop.xlane.xlu0 %1855  ;;  %v1868_v36 = vmul.f32 %v2773_v8, %v3456_v44 }
 0x31f   :  { %2782 = vrcp.f32 %v1856_v41  ;;  %2680 = vmatmul.mubr.msk.f32.vlgmr.msra.gmra.mrb[54].mxu0 %vm1747_vm11, %v1870_v9 }
 0x320   :  { %v2775_v38 = vpop.eup %2774  ;;  %2671 = vmatmul.mubr.msk.f32.gmra.mrb[52].mxu1 %vm1747_vm11, %v1868_v36  ;;  %2682 = vmatprep.mubr.msk.f32.mxu0 %vm3630_vm1, %v2784_v0 }
 0x321   :  { %v2777_v39 = vpop.eup %2776  ;;  %2694 = vmatprep.mubr.msk.f32.mxu1 %vm3630_vm1, %v2784_v0  ;;  %v1872_v17 = vmul.f32 %v2775_v38, %v3462_v11 }
 0x322   :  { %v1876_v28 = vmul.f32 %v2777_v39, %v3464_v37 }
 0x323   :  { %2683 = vmatmul.mubr.msk.f32.gmra.mrb[56].mxu0 %vm1747_vm11, %v1872_v17 }
 0x324   :  { %v2779_v40 = vpop.eup %2778  ;;  %2695 = vmatmul.mubr.msk.f32.vlgmr.msra.gmra.mrb[54].mxu1 %vm1747_vm11, %v1876_v28  ;;  %2685 = vmatprep.mubr.msk.f32.mxu0 %vm3630_vm1, %v2784_v0 }
 0x325   :  { %v2781_v29 = vpop.eup %2780  ;;  %2697 = vmatprep.mubr.msk.f32.mxu1 %vm3630_vm1, %v2784_v0  ;;  %v1874_v45 = vmul.f32 %v2779_v40, %v3470_v43 }
 0x326   :  { %v1878_v42 = vmul.f32 %v2781_v29, %v3472_v46 }
 0x327   :  { %2686 = vmatmul.mubr.msk.f32.gmra.mrb[58].mxu0 %vm1747_vm11, %v1874_v45 }
 0x328   :  { %2698 = vmatmul.mubr.msk.f32.gmra.mrb[56].mxu1 %vm1747_vm11, %v1878_v42 }
 0x329   :  { %v2783_v48 = vpop.eup %2782  ;;  %2700 = vmatprep.mubr.msk.f32.mxu1 %vm3630_vm1, %v2784_v0 }
 0x32a   :  { %v1880_v49 = vmul.f32 %v2783_v48, %v3478_v18 }
 0x32c   :  { %2701 = vmatmul.mubr.msk.f32.gmra.mrb[58].mxu1 %vm1747_vm11, %v1880_v49  ;;  %vm2252_vm11 = vcmask 19456  }
 0x3e5   :  { %v2052_v50 = vpop.f32.mrb[48].mxu1 }
 0x3e6   :  { %v1960_v51 = vpop.f32.mrb[48].mxu0  ;;  %2254 = vst.msk [vmem:[%s3593_s7 + $0x18] sm:$0xff] %vm3633_vm5, %v2052_v50  ;;  %v2666_v52 = vpop.f32.mrb[49].mxu1 }
 0x3e7   :  { %2250 = vst.msk [vmem:[%s3593_s7] sm:$0xff] %vm3634_vm7, %v1960_v51  ;;  %v2651_v53 = vpop.f32.mrb[49].mxu0 }
 0x3ea   :  { %v1965_v47 = vpop.f32.mrb[50].mxu0 }
 0x3eb   :  { %2251 = vst.msk [vmem:[%s3593_s7 + $0x8] sm:$0xff] %vm3635_vm12, %v1965_v47  ;;  %v2654_v0 = vpop.f32.mrb[51].mxu0 }
 0x3ee   :  { %v1970_v54 = vpop.f32.mrb[52].mxu0 }
 0x3ef   :  { %2253 = vst.msk [vmem:[%s3593_s7 + $0x10] sm:$0xf] %vm2252_vm11, %v1970_v54  ;;  %v2057_v55 = vpop.f32.mrb[50].mxu1  ;;  %v2657_v56 = vpop.f32.mrb[53].mxu0 }
 0x3f0   :  { %2255 = vst.msk [vmem:[%s3593_s7 + $0x20] sm:$0xff] %vm3636_vm4, %v2057_v55  ;;  %v2669_v35 = vpop.f32.mrb[51].mxu1 }
 0x3f2   :  { %v2144_v61 = vpop.f32.mrb[54].mxu0 }
 0x3f3   :  { %v2062_v62 = vpop.f32.mrb[52].mxu1  ;;  %2257 = vst.msk [vmem:[%s3593_s7 + $0x30] sm:$0xff] %vm3637_vm13, %v2144_v61  ;;  %v2681_v2 = vpop.f32.mrb[55].mxu0 }
 0x3f4   :  { %2256 = vst.msk [vmem:[%s3593_s7 + $0x28] sm:$0xf] %vm2252_vm11, %v2062_v62  ;;  %v2672_v57 = vpop.f32.mrb[53].mxu1 }
 0x3f6   :  { %v2149_v4 = vpop.f32.mrb[56].mxu0 }
 0x3f7   :  { %2258 = vst.msk [vmem:[%s3593_s7 + $0x38] sm:$0xff] %vm3638_vm9, %v2149_v4  ;;  %v2236_v44 = vpop.f32.mrb[54].mxu1  ;;  %v2684_v7 = vpop.f32.mrb[57].mxu0 }
 0x3f8   :  { %2260 = vst.msk [vmem:[%s3593_s7 + $0x48] sm:$0xff] %vm3639_vm0, %v2236_v44  ;;  %v2696_v10 = vpop.f32.mrb[55].mxu1 }
 0x3fa   :  { %v2154_v11 = vpop.f32.mrb[58].mxu0 }
 0x3fb   :  { %2259 = vst.msk [vmem:[%s3593_s7 + $0x40] sm:$0xf] %vm2252_vm11, %v2154_v11  ;;  %v2241_v37 = vpop.f32.mrb[56].mxu1  ;;  %v2687_v12 = vpop.f32.mrb[59].mxu0 }
 0x3fc   :  { %2261 = vst.msk [vmem:[%s3593_s7 + $0x50] sm:$0xff] %vm3640_vm14, %v2241_v37  ;;  %v2699_v13 = vpop.f32.mrb[57].mxu1 }
 0x3ff   :  { %v2246_v43 = vpop.f32.mrb[58].mxu1 }
 0x400   :  { %2262 = vst.msk [vmem:[%s3593_s7 + $0x58] sm:$0xf] %vm2252_vm11, %v2246_v43  ;;  %v2702_v46 = vpop.f32.mrb[59].mxu1 }

</bundles_post_ra>
